<compile_context>
chip_gen: v7x
topology: tpu7x:2x2x1
jax: 0.10.0
libtpu: 0.0.40
codegen_flags: <defaults>
</compile_context>

<pallas_src>
import jax
import jax.numpy as jnp
from jax.experimental import pallas as pl
from jax.experimental.pallas import tpu as pltpu


def convtmp_kernel(tmp_ref, cur_ref, w_ref, b_ref, o_ref):
    # tmp_ref / cur_ref / o_ref : (C, TP)   pixels on the lane axis (lane-dense)
    # w_ref : (2, C, C)  stacked [W_tmp, W_cur], each in (out_ch, in_ch) layout
    # b_ref : (C, 1)     fused bias  (b_tmp + b_cur)
    y = jnp.dot(w_ref[0, :, :], tmp_ref[...], preferred_element_type=jnp.float32)
    y = y + jnp.dot(w_ref[1, :, :], cur_ref[...], preferred_element_type=jnp.float32)
    o_ref[...] = jnp.tanh(y + b_ref[...]).astype(o_ref.dtype)


def _round_up(x, m):
    return ((x + m - 1) // m) * m


def conv_tmp_forward(tmp_f, cur_f, w_tmp, b_tmp, w_cur, b_cur, *, tile_pix=512):
    """Pallas equivalent of ConvTmp.forward.

    tmp_f, cur_f : (N, C, H, W)  float32
    w_tmp, w_cur : (C, C, 1, 1)  PyTorch Conv2d weight layout (out, in, 1, 1)
    b_tmp, b_cur : (C,)
    returns (out, out) with out of shape (N, C, H, W)
    """
    N, C, H, W = tmp_f.shape
    P = H * W

    # Free reshape: NCHW -> (N, C, P); pixels land on the lane axis.
    x_tmp = tmp_f.reshape(N, C, P)
    x_cur = cur_f.reshape(N, C, P)

    # Conv2d(k=1): y[n, o, p] = sum_i W[o, i] * x[n, i, p] + b[o]
    # -> per tile: W (C, C) @ X (C, TP).  No weight transpose needed.
    w_stack = jnp.stack([w_tmp.reshape(C, C), w_cur.reshape(C, C)], axis=0)  # (2, C, C)
    b_sum = (b_tmp + b_cur).reshape(C, 1)                                    # (C, 1)

    # Pixel tile: >=128 (lane width), default 512, no bigger than needed, and
    # capped by a conservative VMEM budget (tmp + cur + out streams, double
    # buffered, f32) so the same code is safe on v7x's smaller VMEM.
    vmem_budget = 16 * 1024 * 1024
    bytes_per_pix = 3 * 2 * C * 4
    tp_cap = max(128, (vmem_budget // bytes_per_pix) // 128 * 128)
    tp = max(128, min(tile_pix, _round_up(P, 128), tp_cap))

    # Pad the pixel axis to a multiple of the tile (padded region sliced off).
    P_pad = _round_up(P, tp)
    if P_pad != P:
        pad = ((0, 0), (0, 0), (0, P_pad - P))
        x_tmp = jnp.pad(x_tmp, pad)
        x_cur = jnp.pad(x_cur, pad)

    grid = (N, P_pad // tp)

    cost = pl.CostEstimate(
        flops=2 * 2 * C * C * N * P_pad,          # two (C,C)@(C,P) matmuls
        transcendentals=N * C * P_pad,            # tanh
        bytes_accessed=3 * N * C * P_pad * 4 + 2 * C * C * 4 + C * 4,
    )

    out_pad = pl.pallas_call(
        convtmp_kernel,
        out_shape=jax.ShapeDtypeStruct((N, C, P_pad), tmp_f.dtype),
        grid_spec=pltpu.PrefetchScalarGridSpec(
            num_scalar_prefetch=0,
            grid=grid,
            in_specs=[
                pl.BlockSpec((None, C, tp), lambda n, j: (n, 0, j)),  # tmp pixels
                pl.BlockSpec((None, C, tp), lambda n, j: (n, 0, j)),  # cur pixels
                pl.BlockSpec((2, C, C), lambda n, j: (0, 0, 0)),      # stacked weights
                pl.BlockSpec((C, 1), lambda n, j: (0, 0)),            # fused bias
            ],
            out_specs=pl.BlockSpec((None, C, tp), lambda n, j: (n, 0, j)),
        ),
        compiler_params=pltpu.CompilerParams(
            dimension_semantics=("parallel", "parallel")),
        cost_estimate=cost,
    )(x_tmp, x_cur, w_stack, b_sum)

    out = out_pad[:, :, :P].reshape(N, C, H, W)
    return out, out


if __name__ == "__main__":
    # Small shapes consistent with the module: batch=2, dim(channels)=4, spatial=16.
    N, C, H, W = 2, 4, 16, 16

    key = jax.random.PRNGKey(0)
    k1, k2, k3, k4, k5, k6 = jax.random.split(key, 6)

    tmp_f = jax.random.normal(k1, (N, C, H, W), dtype=jnp.float32)
    cur_f = jax.random.normal(k2, (N, C, H, W), dtype=jnp.float32)

    # PyTorch Conv2d parameter shapes: (out, in, 1, 1) and (out,).
    w_tmp = 0.3 * jax.random.normal(k3, (C, C, 1, 1), dtype=jnp.float32)
    b_tmp = 0.1 * jax.random.normal(k4, (C,), dtype=jnp.float32)
    w_cur = 0.3 * jax.random.normal(k5, (C, C, 1, 1), dtype=jnp.float32)
    b_cur = 0.1 * jax.random.normal(k6, (C,), dtype=jnp.float32)

    out1, out2 = conv_tmp_forward(tmp_f, cur_f, w_tmp, b_tmp, w_cur, b_cur)
    jax.block_until_ready((out1, out2))

    # Pure-JAX reference (1x1 conv == per-pixel channel matmul).
    def ref_conv1x1(x, w, b):
        y = jnp.einsum("nchw,oc->nohw", x, w.reshape(C, C))
        return y + b.reshape(1, C, 1, 1)

    ref = jnp.tanh(ref_conv1x1(tmp_f, w_tmp, b_tmp) + ref_conv1x1(cur_f, w_cur, b_cur))
    assert out1.shape == (N, C, H, W)
    assert jnp.allclose(out1, ref, atol=1e-5, rtol=1e-5)
    assert jnp.array_equal(out1, out2)

    print("KERNEL_OK")
</pallas_src>

<mosaic_0001>
module attributes {stable_mosaic.version = 11 : i64} {
  func.func @convtmp_kernel(%arg0: i32, %arg1: i32, %arg2: memref<1x4x256xf32, #tpu.memory_space<vmem>>, %arg3: memref<1x4x256xf32, #tpu.memory_space<vmem>>, %arg4: memref<2x4x4xf32, #tpu.memory_space<vmem>>, %arg5: memref<4x1xf32, #tpu.memory_space<vmem>>, %arg6: memref<1x4x256xf32, #tpu.memory_space<vmem>>) attributes {dimension_semantics = [#tpu.dimension_semantics<parallel>, #tpu.dimension_semantics<parallel>], iteration_bounds = array<i64: 2, 1>, scalar_prefetch = 0 : i64, scratch_operands = 0 : i64, tpu.core_type = #tpu.core_type<tc>, window_params = [{transform_indices = @transform_0, window_bounds = array<i64: 1, 4, 256>}, {transform_indices = @transform_1, window_bounds = array<i64: 1, 4, 256>}, {pipeline_mode = #tpu.pipeline_mode<synchronous>, transform_indices = @transform_2, window_bounds = array<i64: 2, 4, 4>}, {pipeline_mode = #tpu.pipeline_mode<synchronous>, transform_indices = @transform_3, window_bounds = array<i64: 4, 1>}, {transform_indices = @transform_4, window_bounds = array<i64: 1, 4, 256>}]} {
    %c0 = arith.constant 0 : index
    %c0_0 = arith.constant 0 : index
    %c0_1 = arith.constant 0 : index
    %0 = vector.load %arg4[%c0, %c0_0, %c0_1] : memref<2x4x4xf32, #tpu.memory_space<vmem>>, vector<1x4x4xf32>
    %1 = vector.shape_cast %0 : vector<1x4x4xf32> to vector<4x4xf32>
    %c0_2 = arith.constant 0 : index
    %c0_3 = arith.constant 0 : index
    %c0_4 = arith.constant 0 : index
    %2 = vector.load %arg2[%c0_2, %c0_3, %c0_4] : memref<1x4x256xf32, #tpu.memory_space<vmem>>, vector<1x4x256xf32>
    %3 = vector.shape_cast %2 : vector<1x4x256xf32> to vector<4x256xf32>
    %cst = arith.constant dense<0.000000e+00> : vector<4x256xf32>
    %4 = tpu.matmul %1, %3, %cst {dimension_numbers = #tpu.dot_dimension_numbers<[1], [0], [0], [1], [0, 0, 1, 1], [], []>} : vector<4x4xf32>, vector<4x256xf32>, vector<4x256xf32> -> vector<4x256xf32>
    %c1 = arith.constant 1 : index
    %c0_5 = arith.constant 0 : index
    %c0_6 = arith.constant 0 : index
    %5 = vector.load %arg4[%c1, %c0_5, %c0_6] : memref<2x4x4xf32, #tpu.memory_space<vmem>>, vector<1x4x4xf32>
    %6 = vector.shape_cast %5 : vector<1x4x4xf32> to vector<4x4xf32>
    %c0_7 = arith.constant 0 : index
    %c0_8 = arith.constant 0 : index
    %c0_9 = arith.constant 0 : index
    %7 = vector.load %arg3[%c0_7, %c0_8, %c0_9] : memref<1x4x256xf32, #tpu.memory_space<vmem>>, vector<1x4x256xf32>
    %8 = vector.shape_cast %7 : vector<1x4x256xf32> to vector<4x256xf32>
    %cst_10 = arith.constant dense<0.000000e+00> : vector<4x256xf32>
    %9 = tpu.matmul %6, %8, %cst_10 {dimension_numbers = #tpu.dot_dimension_numbers<[1], [0], [0], [1], [0, 0, 1, 1], [], []>} : vector<4x4xf32>, vector<4x256xf32>, vector<4x256xf32> -> vector<4x256xf32>
    %10 = arith.addf %4, %9 : vector<4x256xf32>
    %c0_11 = arith.constant 0 : index
    %c0_12 = arith.constant 0 : index
    %11 = vector.load %arg5[%c0_11, %c0_12] : memref<4x1xf32, #tpu.memory_space<vmem>>, vector<4x1xf32>
    %12 = vector.broadcast %11 : vector<4x1xf32> to vector<4x256xf32>
    %13 = arith.addf %10, %12 : vector<4x256xf32>
    %14 = math.tanh %13 : vector<4x256xf32>
    %c0_13 = arith.constant 0 : index
    %c0_14 = arith.constant 0 : index
    %c0_15 = arith.constant 0 : index
    %15 = vector.load %arg6[%c0_13, %c0_14, %c0_15] : memref<1x4x256xf32, #tpu.memory_space<vmem>>, vector<1x4x256xf32>
    %16 = vector.shape_cast %15 : vector<1x4x256xf32> to vector<4x256xf32>
    %17 = vector.shape_cast %14 : vector<4x256xf32> to vector<1x4x256xf32>
    tpu.vector_store %arg6[%c0_13, %c0_14, %c0_15], %17 {strides = array<i32>} : memref<1x4x256xf32, #tpu.memory_space<vmem>>, vector<1x4x256xf32>,
    return
  }
  func.func @transform_0(%arg0: i32, %arg1: i32) -> (i32, i32, i32) {
    %c0_i32 = arith.constant 0 : i32
    %c0_i32_0 = arith.constant 0 : i32
    return %arg0, %c0_i32, %arg1 : i32, i32, i32
  }
  func.func @transform_1(%arg0: i32, %arg1: i32) -> (i32, i32, i32) {
    %c0_i32 = arith.constant 0 : i32
    %c0_i32_0 = arith.constant 0 : i32
    return %arg0, %c0_i32, %arg1 : i32, i32, i32
  }
  func.func @transform_2(%arg0: i32, %arg1: i32) -> (i32, i32, i32) {
    %c0_i32 = arith.constant 0 : i32
    %c0_i32_0 = arith.constant 0 : i32
    %c0_i32_1 = arith.constant 0 : i32
    %c0_i32_2 = arith.constant 0 : i32
    return %c0_i32, %c0_i32_0, %c0_i32_1 : i32, i32, i32
  }
  func.func @transform_3(%arg0: i32, %arg1: i32) -> (i32, i32) {
    %c0_i32 = arith.constant 0 : i32
    %c0_i32_0 = arith.constant 0 : i32
    %c0_i32_1 = arith.constant 0 : i32
    return %c0_i32, %c0_i32_0 : i32, i32
  }
  func.func @transform_4(%arg0: i32, %arg1: i32) -> (i32, i32, i32) {
    %c0_i32 = arith.constant 0 : i32
    %c0_i32_0 = arith.constant 0 : i32
    return %arg0, %c0_i32, %arg1 : i32, i32, i32
  }
}

</mosaic_0001>

<bundles_post_ra>
// kernel: tpu_custom_call.1
= control target key start
LH: loop header
LB: loop body
LE: loop exit
PB: predicated region body
PF: predicated region fallthrough
CT: control target
= control target key end

     0   :  { %9 = vsyncpa [#allocation3], 0  ;;  %s1105_s0 = inlined_call_operand.hbm [shape: f32[2,4,256], index: 0, kind: input, shape index: {}]   ;;  %s1106_s1 = inlined_call_operand.hbm [shape: f32[2,4,256], index: 1, kind: input, shape index: {}]   ;;  %s1107_s2 = inlined_call_operand.vmem [shape: f32[2,4,4], index: 2, kind: input, shape index: {}]   ;;  %s1108_s3 = inlined_call_operand.vmem [shape: f32[4,1], index: 3, kind: input, shape index: {}]   ;;  %s1109_s4 = inlined_call_operand.hbm [shape: f32[2,4,256], index: 4, kind: output, shape index: {}]  }
   0x1   :  { %11 = vsyncpa [#allocation3 + $0x1], 0 }
   0x2   :  { %12 = vsyncpa [#allocation6], 0 }
   0x3   :  { %14 = vsyncpa [#allocation6 + $0x1], 0 }
   0x4   :  { %15 = vsyncpa [#allocation4], 0 }
   0x5   :  { %17 = vsyncpa [#allocation4 + $0x1], 0  ;;  %s871_s15 = smov 0   ;;  %s873_s16 = smov 0  }
   0x6   :  { %s875_s17 = smov 0   ;;  %s877_s18 = smov 0  }
   0x7   :  { %s879_s19 = smov 0   ;;  %s881_s20 = smov 0  }
   0x8 LB: > { %s586_s21 = sadd.s32 4294967295, %s839_s20   ;;  %s587_s22 = sadd.s32 4294967294, %s839_s20   ;;  %s839_s20 = sphi %s881_s20, %s23_s20   ;;  %s835_s19 = sphi %s879_s19, %s1129_s19   ;;  %s831_s18 = sphi %s877_s18, %s1128_s18   ;;  %s827_s17 = sphi %s875_s17, %s1127_s17   ;;  %s823_s16 = sphi %s873_s16, %s1126_s16   ;;  %s819_s15 = sphi %s871_s15, %s1125_s15  }
   0x9   : > { %s35_s23 = sadd.s32 1, %s835_s19  ;;  %s44_s24 = sadd.s32 1, %s827_s17 }
   0xa   : > { %p37_p0 = scmp.ge.s32.totalorder %s35_s23, 2  ;;  %p51_p1 = scmp.ne.s32.totalorder %s827_s17, %s823_s16 }
   0xb   : > { %p52_p2 = scmp.eq.s32.totalorder %s839_s20, 0  ;;  %p57_p3 = scmp.ne.s32.totalorder %s823_s16, %s819_s15 }
   0xc   : > { %s1131_s23 = smov (%p37_p0, %s35_s23), 0  ;;  %p58_p5 = scmp.eq.s32.totalorder %s586_s21, 0 }
   0xd   : > { %p912_p4 = por %p52_p2, %p51_p1  ;;  %s39_s26 = ssub.s32 %s835_s19, %s1131_s23 }
   0xe   : > { %p153_p6 = scmp.eq.s32.totalorder %s586_s21, 1  ;;  %p42_p7 = scmp.eq.s32.totalorder %s39_s26, 0 }
   0xf   : > { %p918_p8 = por %p58_p5, %p57_p3  ;;  %p159_p10 = scmp.eq.s32.totalorder %s587_s22, 1 }
  0x10   : > { %p922_p9 = por %p153_p6, %p51_p1  ;;  %p634_p13 = scmp.lt.s32.totalorder %s839_s20, 2 }
  0x11   : > { %s1113_s27 = scalar_select %p918_p8, 1, 0 }
  0x12   : > { %s1114_s28 = scalar_select %p922_p9, 1, 0 }
  0x13   : > { %s927_s29 = scalar_select %p42_p7, %s827_s17, %s44_s24  }
  0x14   : > { %p929_p11 = por %p159_p10, %p57_p3  ;;  %s936_s5 = sand.u32 1, %s827_s17  }
  0x15   : > { %s590_s6 = sshll.u32 %s936_s5, 3  ;;  %s612_s7 = sshll.u32 %s835_s19, 7 }
  0x16   : > { %s1115_s30 = scalar_select %p929_p11, 1, 0 }
  0x17   : > { %s945_s10 = scalar_lea.hbm %s1105_s0, %s612_s7  ;;  %s189_s11 = scalar_lea.vmem [#allocation2], %s590_s6 }
  0x18   : > { %s199_s12 = sshll.u32 %s189_s11, 4  ;;  %p953_p0 = pnand %p634_p13, %p912_p4  ;;  %s949_s12 = int_to_ptr.vmem [resolvable:$true] %s199_s12 }
  0x19   : > { %s186_s14 = scalar_lea.sflag [#allocation3], %s936_s5  ;;  %s693_s21 = scalar_lea.hbm %s945_s10, 128 }
  0x1a   : > { %p694_p3 = scmp.ne.s32.totalorder %s945_s10, %s693_s21  ;;  %p695_p5 = pneg %p953_p0 }
  0x1b   : > { %s698_s25 = scalar_lea.hbm %s1105_s0, 256  ;;  %p699_p4 = scmp.lt.u32.totalorder %s945_s10, %s1105_s0 }
  0x1c   : > { %p696_p6 = pnand %p695_p5, %p694_p3  ;;  %p700_p10 = scmp.lt.u32.totalorder %s698_s25, %s693_s21 }
  0x1d   : > { %p702_p12 = scmp.lt.u32.totalorder %s693_s21, %s945_s10 }
  0x1e   : > { %p697_p7 = pneg %p696_p6  ;;  %p701_p13 = por %p700_p10, %p699_p4 }
  0x20   : > { %p703_p1 = por %p702_p12, %p701_p13 }
  0x22   : > { %p704_p2 = pnand %p703_p1, %p697_p7 }
  0x24   : > { %707 = shalt.err (!%p704_p2)
}
  0x25   : > { %s708_s9 = scalar_lea.vmem %s949_s12, 128  ;;  %s841_s11 = smov [#allocation2]  }
  0x26   : > { %p709_p3 = scmp.ne.s32.totalorder %s949_s12, %s708_s9  ;;  %s713_s22 = sshll.u32 %s841_s11, 4  ;;  %s714_s22 = int_to_ptr.vmem [resolvable:$false] %s713_s22 }
  0x27   : > { %s715_s24 = scalar_lea.vmem %s714_s22, 256  ;;  %p716_p9 = scmp.lt.s32.totalorder %s949_s12, %s714_s22 }
  0x28   : > { %p711_p6 = pnand %p709_p3, %p695_p5  ;;  %p717_p4 = scmp.lt.s32.totalorder %s715_s24, %s708_s9 }
  0x2a   : > { %p712_p11 = pneg %p711_p6  ;;  %p718_p10 = por %p717_p4, %p716_p9 }
  0x2c   : > { %p719_p12 = pnand %p718_p10, %p712_p11 }
  0x2e   : > { %722 = shalt.err (!%p719_p12)
}
  0x2f   : > { %626 = dma.hbm_to_vmem [thread:$0]  (!%p953_p0), %s945_s10, 128, %s949_s12, %s186_s14  }
  0x30   : > { %p1117_p1 = scmp.lt.s32.totalorder %s839_s20, 3  ;;  %p1118_p2 = scmp.ge.s32.totalorder %s839_s20, 1 }
  0x31   : > { %s998_s8 = scalar_lea.hbm %s1106_s1, %s612_s7  ;;  %s210_s9 = scalar_lea.vmem [#allocation5], %s590_s6 }
  0x32   : > { %p989_p7 = pnand %p1118_p2, %p1117_p1  ;;  %s220_s11 = sshll.u32 %s210_s9, 4  ;;  %s221_s11 = int_to_ptr.vmem [resolvable:$true] %s220_s11 }
  0x33   : > { %s207_s10 = scalar_lea.sflag [#allocation6], %s936_s5  ;;  %s723_s12 = scalar_lea.hbm %s998_s8, 128 }
  0x34   : > { %s1119_s21 = scalar_select %p989_p7, 1, 0 }
  0x35   : > { %p724_p9 = scmp.ne.s32.totalorder %s998_s8, %s723_s12  ;;  %s728_s7 = scalar_lea.hbm %s1106_s1, 256 }
  0x36   : > { %p729_p3 = scmp.lt.u32.totalorder %s998_s8, %s1106_s1  ;;  %p730_p6 = scmp.lt.u32.totalorder %s728_s7, %s723_s12 }
  0x37   : > { %p726_p11 = pnand %p724_p9, %p695_p5  ;;  %p732_p10 = scmp.lt.u32.totalorder %s723_s12, %s998_s8 }
  0x38   : > { %p731_p4 = por %p730_p6, %p729_p3 }
  0x39   : > { %p727_p13 = pneg %p726_p11 }
  0x3a   : > { %p733_p12 = por %p732_p10, %p731_p4 }
  0x3c   : > { %p734_p1 = pnand %p733_p12, %p727_p13 }
  0x3e   : > { %737 = shalt.err (!%p734_p1)
}
  0x3f   : > { %s738_s5 = scalar_lea.vmem %s221_s11, 128  ;;  %s842_s6 = smov [#allocation5]  }
  0x40   : > { %p739_p2 = scmp.ne.s32.totalorder %s221_s11, %s738_s5  ;;  %s743_s26 = sshll.u32 %s842_s6, 4  ;;  %s744_s26 = int_to_ptr.vmem [resolvable:$false] %s743_s26 }
  0x41   : > { %s745_s9 = scalar_lea.vmem %s744_s26, 256  ;;  %p746_p8 = scmp.lt.s32.totalorder %s221_s11, %s744_s26 }
  0x42   : > { %p741_p9 = pnand %p739_p2, %p695_p5  ;;  %p747_p7 = scmp.lt.s32.totalorder %s745_s9, %s738_s5 }
  0x44   : > { %p742_p11 = pneg %p741_p9  ;;  %p748_p3 = por %p747_p7, %p746_p8 }
  0x46   : > { %p749_p6 = pnand %p748_p3, %p742_p11 }
  0x48   : > { %752 = shalt.err (!%p749_p6)
}
  0x49   : > { %629 = dma.hbm_to_vmem [thread:$0]  (!%p953_p0), %s998_s8, 128, %s221_s11, %s207_s10  }
  0x4a   : > { %p1120_p13 = scmp.ne.s32.totalorder %s1119_s21, 0 }
  0x4b   : > { %s1025_s12 = sand.u32 (!%p1120_p13), 1, %s823_s16   ;;  %p1121_p8 = scmp.ne.s32.totalorder (!%p1120_p13), %s1113_s27, 0 }
  0x4c   : > { %229 = sbr.rel (%p1120_p13) target bundleno = 336 (0x150), region = 36  ;;  %s1028_s14 = sshll.u32 (!%p1120_p13), %s1025_s12, 3 }
  0x4d   : > { %s232_s22 = scalar_lea.sflag (!%p1120_p13), [#allocation3], %s1025_s12  ;;  %s235_s7 = scalar_lea.vmem (!%p1120_p13), [#allocation2], %s1028_s14 }
  0x53   : > { %806 = dma.done.wait (%p1121_p8), %s232_s22, 128  }
  0x54   : > { %808 = vsyncadd (%p1121_p8), %s232_s22, 4294967168  ;;  %s241_s13 = scalar_lea.sflag [#allocation6], %s1025_s12  ;;  %s244_s21 = scalar_lea.vmem [#allocation5], %s1028_s14 }
  0x55   : > { %810 = dma.done.wait (%p1121_p8), %s241_s13, 128  }
  0x56   : > { %812 = vsyncadd (%p1121_p8), %s241_s13, 4294967168  ;;  %v843_v0 = vmov 0.0   ;;  %v844_v1 = vmov 0   ;;  %v281_v2 = vld [vmem:[%s244_s21] sm:$0xff]  ;;  %vm288_vm0 = vcmask 1043456   ;;  %v278_v3 = vld [vmem:[%s235_s7] sm:$0xff] }
  0x57   : > { %357 = vmatprep.mubr.f32.mxu1 %v843_v0  ;;  %437 = vmatprep.mubr.f32.mxu0 %v843_v0  ;;  %v283_v4 = vcombine.high %v281_v2, %v281_v2  ;;  %v365_v5 = vcombine.high %v278_v3, %v278_v3  ;;  %v444_v6 = vld [vmem:[%s1108_s3] sm:$0xf]  ;;  %v600_v7 = vld [vmem:[%s1107_s2 + $0x4] sm:$0xf]  ;;  %vm284_vm1 = vcmask 31744   ;;  %s614_s5 = sshll.u32 %s831_s18, 7 }
  0x58   : > { %686 = vset.pattern.permute.xlu0 %v844_v1  ;;  %v277_v8 = vld [vmem:[%s1107_s2] sm:$0xf]  ;;  %s273_s6 = scalar_lea.vmem [#allocation7], %s1028_s14  ;;  %s1056_s7 = scalar_lea.hbm %s1109_s4, %s614_s5 }
  0x59   : > { %447 = vperm.xlu0 %686, %v444_v6   ;;  %601 = vmatprep.subr.msk.mxu1 %vm288_vm0, %v283_v4  ;;  %s476_s26 = sshll.u32 %s273_s6, 4  ;;  %s460_s13 = scalar_lea.sflag [#allocation4], %s1025_s12  ;;  %s1058_s26 = int_to_ptr.vmem [resolvable:$true] %s476_s26 }
  0x5a   : > { %604 = vmatprep.subr.msk.mxu0 %vm288_vm0, %v365_v5  ;;  %602 = vmatpush1.msk.msra.mxu1 %vm288_vm0, %v281_v2  ;;  %s753_s21 = scalar_lea.vmem %s1058_s26, 128  ;;  %p1122_p5 = scmp.ne.s32.totalorder %s1114_s28, 0 }
  0x5b   : > { %605 = vmatpush1.msk.msra.mxu0 %vm288_vm0, %v278_v3  ;;  %603 = vmatmul.mubr.msk.f32.vlgmr.msra.gmra.mrb[0].mxu1 %vm284_vm1, %v600_v7  ;;  %p754_p0 = scmp.ne.s32.totalorder %s1058_s26, %s753_s21  ;;  %s845_s18 = smov [#allocation7]  }
  0x5c   : > { %606 = vmatmul.mubr.msk.f32.vlgmr.msra.gmra.mrb[0].mxu0 %vm284_vm1, %v277_v8  ;;  %s757_s14 = sshll.u32 %s845_s18, 4  ;;  %s758_s14 = int_to_ptr.vmem [resolvable:$false] %s757_s14 }
  0x5d   : > { %p755_p7 = pnand %p754_p0, %p1122_p5  ;;  %s759_s8 = scalar_lea.vmem %s758_s14, 256 }
  0x5e   : > { %p760_p10 = scmp.lt.s32.totalorder %s1058_s26, %s758_s14  ;;  %p761_p12 = scmp.lt.s32.totalorder %s759_s8, %s753_s21 }
  0x5f   : > { %p756_p4 = pneg %p755_p7 }
  0x60   : > { %p762_p1 = por %p761_p12, %p760_p10 }
  0x62   : > { %p763_p2 = pnand %p762_p1, %p756_p4 }
  0xd8   : > { %v448_v9 = vpop.permute.xlu0 %447 }
 0x12e   : > { %v359_v10 = vpop.f32.mrb[0].mxu1 }
 0x12f   : > { %v439_v11 = vpop.f32.mrb[0].mxu0  ;;  %v361_v13 = vpop.f32.mrb[1].mxu1 }
 0x130   : > { %v440_v12 = vadd.f32 %v439_v11, %v359_v10  ;;  %v441_v14 = vpop.f32.mrb[1].mxu0 }
 0x131   : > { %v442_v15 = vadd.f32 %v441_v14, %v361_v13 }
 0x132   : > { %v450_v16 = vadd.f32 %v448_v9, %v440_v12 }
 0x133   : > { %v451_v17 = vadd.f32 %v448_v9, %v442_v15 }
 0x134   : > { %689 = vtanh.f32 %v450_v16 }
 0x135   : > { %691 = vtanh.f32 %v451_v17 }
 0x13e   : > { %v690_v18 = vpop.eup %689 }
 0x13f   : > { %v692_v19 = vpop.eup %691 }
 0x140   : > { %v456_v20 = vcombine.low %v690_v18, %v692_v19 }
 0x142   : > { %458 = vst [vmem:[%s273_s6] sm:$0xff] %v456_v20 }
 0x143   : > { %766 = shalt.err (!%p763_p2)
}
 0x144   : > { %s767_s12 = scalar_lea.hbm %s1056_s7, 128  ;;  %s771_s24 = scalar_lea.hbm %s1109_s4, 256 }
 0x145   : > { %p768_p9 = scmp.ne.s32.totalorder %s1056_s7, %s767_s12  ;;  %p772_p6 = scmp.lt.u32.totalorder %s1056_s7, %s1109_s4 }
 0x146   : > { %p773_p13 = scmp.lt.u32.totalorder %s771_s24, %s767_s12  ;;  %p775_p0 = scmp.lt.u32.totalorder %s767_s12, %s1056_s7 }
 0x147   : > { %p769_p11 = pnand %p768_p9, %p1122_p5 }
 0x148   : > { %p774_p8 = por %p773_p13, %p772_p6 }
 0x149   : > { %p770_p3 = pneg %p769_p11 }
 0x14a   : > { %p776_p7 = por %p775_p0, %p774_p8 }
 0x14c   : > { %p777_p4 = pnand %p776_p7, %p770_p3 }
 0x14e   : > { %780 = shalt.err (!%p777_p4)
}
 0x14f   : > { %621 = dma.vmem_to_hbm [thread:$0]  (%p1122_p5), %s1058_s26, 128, %s1056_s7, %s460_s13  }
 0x150 PF: > { %s488_s5 = sand.u32 1, %s819_s15   ;;  %p1123_p10 = scmp.ne.s32.totalorder %s1115_s30, 0 }
 0x151   : > { %p1124_p12 = scmp.ge.s32.totalorder %s839_s20, 2  ;;  %s489_s6 = scalar_lea.sflag [#allocation4], %s488_s5 }
 0x153   : > { %p631_p1 = pnand %p1124_p12, %p1123_p10 }
 0x155   : > { %814 = dma.done.wait (!%p631_p1), %s489_s6, 128  }
 0x156   : > { %816 = vsyncadd (!%p631_p1), %s489_s6, 4294967168  ;;  %s23_s20 = sadd.s32 1, %s839_s20   ;;  %s1125_s15 = smov %s823_s16 }
 0x157   : > { %p20_p2 = scmp.ge.s32.totalorder %s23_s20, 4   ;;  %s1126_s16 = smov %s827_s17 }
 0x158   : > { %s1127_s17 = smov %s927_s29  ;;  %s1128_s18 = smov %s835_s19 }
 0x159   : > { %s1129_s19 = smov %s1131_s23  ;;  %22 = sbr.rel (!%p20_p2) target bundleno = 8 (0x8), region = 95 }
 0x160   :  { %494 = vsyncpa [#allocation3], 1 }
 0x161   :  { %496 = vsyncpa [#allocation3 + $0x1], 1 }
 0x162   :  { %497 = vsyncpa [#allocation6], 1 }
 0x163   :  { %499 = vsyncpa [#allocation6 + $0x1], 1 }
 0x164   :  { %500 = vsyncpa [#allocation4], 1 }
 0x165   :  { %502 = vsyncpa [#allocation4 + $0x1], 1 }

</bundles_post_ra>
